<compile_context>
chip_gen: v7x
topology: tpu7x:2x2x1
jax: 0.10.0
libtpu: 0.0.40
codegen_flags: <defaults>
</compile_context>

<pallas_src>
import jax
import jax.numpy as jnp
from jax.experimental import pallas as pl
from jax.experimental.pallas import tpu as pltpu


# ----------------------------------------------------------------------------
# Fused kernel: Linear (no bias needed) + BatchNorm1d (batch stats) + ReLU.
# ----------------------------------------------------------------------------
def _nn_layer_kernel(x_ref, w_ref, p_ref, o_ref):
    # x_ref : (N, inp)    input batch
    # w_ref : (out, inp)  Linear weight, native PyTorch layout
    # p_ref : (2, out)    row 0 = gamma, row 1 = beta
    # o_ref : (N, out)
    x = x_ref[...]
    w = w_ref[...]
    gamma = p_ref[0:1, :]   # (1, out) static slices of the packed params
    beta = p_ref[1:2, :]    # (1, out)

    # Single MXU matmul contracting the shared `inp` axis (trans-B handled
    # natively by the MXU; no wrapper-side transpose).
    y = jax.lax.dot_general(
        x, w, (((1,), (1,)), ((), ())),
        preferred_element_type=jnp.float32)                 # (N, out)

    # BatchNorm1d, training mode: both reductions issued back-to-back so the
    # XLU work overlaps; biased variance, eps = 1e-5, clamped at 0 for the
    # E[y^2] - mean^2 form.
    n_inv = 1.0 / y.shape[0]
    mean = jnp.sum(y, axis=0, keepdims=True) * n_inv        # (1, out)
    mean_sq = jnp.sum(y * y, axis=0, keepdims=True) * n_inv  # (1, out)
    var = jnp.maximum(mean_sq - mean * mean, 0.0)

    # Reassociated affine: only one N x out multiply-add remains.
    scale = jax.lax.rsqrt(var + 1e-5) * gamma               # (1, out)
    shift = beta - mean * scale                             # (1, out)

    # ReLU (activation comes AFTER BatchNorm in the module's ModuleList).
    o_ref[...] = jnp.maximum(y * scale + shift, 0.0).astype(o_ref.dtype)


@jax.jit
def nn_layer_forward(x, weight, bias, gamma, beta):
    """Forward pass of NN_layer (Linear -> BatchNorm1d -> ReLU), training mode.

    x:      (N, inp) float32
    weight: (out, inp)  PyTorch nn.Linear weight layout
    bias:   (out,)      accepted for API parity; algebraically cancelled by
                        training-mode BatchNorm, so it is not used.
    gamma, beta: (out,) BatchNorm1d affine params
    returns: (N, out) float32
    """
    del bias  # cancelled: y - mean(y) == xW - mean(xW)
    N, _inp = x.shape
    out = weight.shape[0]

    # Pack the two (out,) params into one small (2, out) array -> single DMA.
    params = jnp.stack([gamma, beta], axis=0)

    # No grid: the whole problem lives in VMEM for one kernel invocation.
    # TODO(synk): for large N, tile the batch (grid over N, "parallel") with a
    # two-pass sum/sumsq BN so both v7x TensorCores are used and VMEM stays
    # within the 64 MiB v7x budget.
    vmem = pltpu.MemorySpace.VMEM
    return pl.pallas_call(
        _nn_layer_kernel,
        out_shape=jax.ShapeDtypeStruct((N, out), jnp.float32),
        in_specs=[
            pl.BlockSpec(memory_space=vmem),
            pl.BlockSpec(memory_space=vmem),
            pl.BlockSpec(memory_space=vmem),
        ],
        out_specs=pl.BlockSpec(memory_space=vmem),
    )(x, weight, params)


# ----------------------------------------------------------------------------
# Pure-JAX reference replicating the PyTorch forward semantics (with bias).
# ----------------------------------------------------------------------------
def reference_forward(x, weight, bias, gamma, beta):
    y = x @ weight.T + bias[None, :]
    mean = jnp.mean(y, axis=0, keepdims=True)
    var = jnp.mean((y - mean) ** 2, axis=0, keepdims=True)
    yn = (y - mean) / jnp.sqrt(var + 1e-5) * gamma[None, :] + beta[None, :]
    return jnp.maximum(yn, 0.0)


if __name__ == "__main__":
    # Small shapes consistent with the module: batch=8, inp=32, out=128
    # (out=128 keeps the output lane-dense).
    N, INP, OUT = 8, 32, 128

    key = jax.random.PRNGKey(0)
    kx, kw, kb, kg, kbe = jax.random.split(key, 5)
    x = jax.random.normal(kx, (N, INP), jnp.float32)
    weight = jax.random.normal(kw, (OUT, INP), jnp.float32) * 0.1
    bias = jax.random.normal(kb, (OUT,), jnp.float32) * 0.1
    gamma = 1.0 + 0.1 * jax.random.normal(kg, (OUT,), jnp.float32)
    beta = 0.1 * jax.random.normal(kbe, (OUT,), jnp.float32)

    out = nn_layer_forward(x, weight, bias, gamma, beta)
    out = jax.block_until_ready(out)

    ref = reference_forward(x, weight, bias, gamma, beta)
    assert out.shape == (N, OUT), out.shape
    assert jnp.allclose(out, ref, atol=1e-4, rtol=1e-4), \
        float(jnp.max(jnp.abs(out - ref)))

    print("KERNEL_OK")
</pallas_src>

<mosaic_0001>
module attributes {stable_mosaic.version = 11 : i64} {
  func.func @_nn_layer_kernel(%arg0: memref<8x32xf32, #tpu.memory_space<vmem>>, %arg1: memref<128x32xf32, #tpu.memory_space<vmem>>, %arg2: memref<2x128xf32, #tpu.memory_space<vmem>>, %arg3: memref<8x128xf32, #tpu.memory_space<vmem>>) attributes {dimension_semantics = [], scalar_prefetch = 0 : i64, scratch_operands = 0 : i64, tpu.core_type = #tpu.core_type<tc>} {
    %c0 = arith.constant 0 : index
    %c0_0 = arith.constant 0 : index
    %0 = vector.load %arg0[%c0, %c0_0] : memref<8x32xf32, #tpu.memory_space<vmem>>, vector<8x32xf32>
    %c0_1 = arith.constant 0 : index
    %c0_2 = arith.constant 0 : index
    %1 = vector.load %arg1[%c0_1, %c0_2] : memref<128x32xf32, #tpu.memory_space<vmem>>, vector<128x32xf32>
    %c0_3 = arith.constant 0 : index
    %c0_4 = arith.constant 0 : index
    %2 = vector.load %arg2[%c0_3, %c0_4] : memref<2x128xf32, #tpu.memory_space<vmem>>, vector<1x128xf32>
    %c1 = arith.constant 1 : index
    %c0_5 = arith.constant 0 : index
    %3 = vector.load %arg2[%c1, %c0_5] : memref<2x128xf32, #tpu.memory_space<vmem>>, vector<1x128xf32>
    %cst = arith.constant dense<0.000000e+00> : vector<8x128xf32>
    %4 = tpu.matmul %0, %1, %cst {dimension_numbers = #tpu.dot_dimension_numbers<[1], [1], [0], [0], [0, 0, 1, 0], [], []>} : vector<8x32xf32>, vector<128x32xf32>, vector<8x128xf32> -> vector<8x128xf32>
    %cst_6 = arith.constant dense<0.000000e+00> : vector<128xf32>
    %5 = vector.multi_reduction <add>, %4, %cst_6 [0] : vector<8x128xf32> to vector<128xf32>
    %6 = vector.shape_cast %5 : vector<128xf32> to vector<1x128xf32>
    %cst_7 = arith.constant 1.250000e-01 : f32
    %7 = vector.broadcast %cst_7 : f32 to vector<1x128xf32>
    %8 = arith.mulf %6, %7 : vector<1x128xf32>
    %9 = arith.mulf %4, %4 : vector<8x128xf32>
    %cst_8 = arith.constant dense<0.000000e+00> : vector<128xf32>
    %10 = vector.multi_reduction <add>, %9, %cst_8 [0] : vector<8x128xf32> to vector<128xf32>
    %11 = vector.shape_cast %10 : vector<128xf32> to vector<1x128xf32>
    %cst_9 = arith.constant 1.250000e-01 : f32
    %12 = vector.broadcast %cst_9 : f32 to vector<1x128xf32>
    %13 = arith.mulf %11, %12 : vector<1x128xf32>
    %14 = arith.mulf %8, %8 : vector<1x128xf32>
    %15 = arith.subf %13, %14 : vector<1x128xf32>
    %cst_10 = arith.constant 0.000000e+00 : f32
    %16 = vector.broadcast %cst_10 : f32 to vector<1x128xf32>
    %17 = arith.maximumf %15, %16 : vector<1x128xf32>
    %cst_11 = arith.constant 9.99999974E-6 : f32
    %18 = vector.broadcast %cst_11 : f32 to vector<1x128xf32>
    %19 = arith.addf %17, %18 : vector<1x128xf32>
    %20 = math.rsqrt %19 : vector<1x128xf32>
    %21 = arith.mulf %20, %2 : vector<1x128xf32>
    %22 = arith.mulf %8, %21 : vector<1x128xf32>
    %23 = arith.subf %3, %22 : vector<1x128xf32>
    %24 = vector.broadcast %21 : vector<1x128xf32> to vector<8x128xf32>
    %25 = arith.mulf %4, %24 : vector<8x128xf32>
    %26 = vector.broadcast %23 : vector<1x128xf32> to vector<8x128xf32>
    %27 = arith.addf %25, %26 : vector<8x128xf32>
    %cst_12 = arith.constant 0.000000e+00 : f32
    %28 = vector.broadcast %cst_12 : f32 to vector<8x128xf32>
    %29 = arith.maximumf %27, %28 : vector<8x128xf32>
    %c0_13 = arith.constant 0 : index
    %c0_14 = arith.constant 0 : index
    %30 = vector.load %arg3[%c0_13, %c0_14] : memref<8x128xf32, #tpu.memory_space<vmem>>, vector<8x128xf32>
    tpu.vector_store %arg3[%c0_13, %c0_14], %29 {strides = array<i32>} : memref<8x128xf32, #tpu.memory_space<vmem>>, vector<8x128xf32>,
    return
  }
}

</mosaic_0001>

<bundles_post_ra>
// kernel: nn_layer_forward.1
= control target key start
LH: loop header
LB: loop body
LE: loop exit
PB: predicated region body
PF: predicated region fallthrough
CT: control target
= control target key end

     0   :  { %vm34_vm0 = vcmask 261120   ;;  %v336_v2 = vmov 0.0|0.0   ;;  %vm337_vm2 = vmmov 0   ;;  %v338_v5 = vmov 0.0   ;;  %s452_s0 = inlined_call_operand.vmem [shape: f32[8,32], index: 0, kind: input, shape index: {}]   ;;  %s453_s1 = inlined_call_operand.vmem [shape: f32[128,32], index: 1, kind: input, shape index: {}]   ;;  %s454_s2 = inlined_call_operand.vmem [shape: f32[2,128], index: 2, kind: input, shape index: {}]   ;;  %s455_s3 = inlined_call_operand.hbm [shape: f32[8,128], index: 3, kind: output, shape index: {}]  }
   0x1   :  { %v16_v0 = vld [vmem:[%s453_s1] sm:$0xff]  ;;  %v17_v1 = vld [vmem:[%s453_s1 + $0x8] sm:$0xff]  ;;  %274 = vmatprep.subr.bf16.mxu0 %v336_v2  ;;  %vm368_vm1 = vmpackc.low %vm34_vm0, %vm34_vm0  ;;  %271 = vmatprep.mubr.msk.f32.mxu0 %vm337_vm2, %v338_v5 }
   0x2   :  { %v275_v3 = vpack.c.bf16 %v17_v1, %v16_v0  ;;  %v18_v6 = vld [vmem:[%s453_s1 + $0x10] sm:$0xff]  ;;  %v19_v7 = vld [vmem:[%s453_s1 + $0x18] sm:$0xff] }
   0x4   :  { %277 = vmatpush3.bf16.xpose.msk.msra.mxu0 %vm368_vm1, %v275_v3 }
   0x5   :  { %278 = vmatprep.subr.bf16.mxu0 %v336_v2 }
   0x6   :  { %8 = vsyncpa [#allocation3], 0  ;;  %v279_v8 = vpack.c.bf16 %v19_v7, %v18_v6  ;;  %v20_v9 = vld [vmem:[%s453_s1 + $0x20] sm:$0xff]  ;;  %v21_v10 = vld [vmem:[%s453_s1 + $0x28] sm:$0xff]  ;;  %v179_v49 = vlaneseq  ;;  %s339_s21 = smov [#allocation2]  }
   0x7   :  { %v283_v11 = vpack.c.bf16 %v21_v10, %v20_v9  ;;  %v22_v12 = vld [vmem:[%s453_s1 + $0x30] sm:$0xff]  ;;  %v23_v13 = vld [vmem:[%s453_s1 + $0x38] sm:$0xff]  ;;  %v24_v15 = vld [vmem:[%s453_s1 + $0x40] sm:$0xff]  ;;  %s197_s22 = sshll.u32 %s339_s21, 4  ;;  %s198_s22 = int_to_ptr.vmem [resolvable:$true] %s197_s22 }
   0x8   :  { %v287_v14 = vpack.c.bf16 %v23_v13, %v22_v12  ;;  %v25_v16 = vld [vmem:[%s453_s1 + $0x48] sm:$0xff]  ;;  %v26_v18 = vld [vmem:[%s453_s1 + $0x50] sm:$0xff]  ;;  %v27_v19 = vld [vmem:[%s453_s1 + $0x58] sm:$0xff]  ;;  %v180_v50 = vshrl.u32 %v179_v49, 7  ;;  %s312_s23 = scalar_lea.vmem %s198_s22, 128  ;;  %p317_p1 = scmp.lt.s32.totalorder %s198_s22, %s198_s22 }
   0x9   :  { %v291_v17 = vpack.c.bf16 %v25_v16, %v24_v15  ;;  %v295_v20 = vpack.c.bf16 %v27_v19, %v26_v18  ;;  %v28_v21 = vld [vmem:[%s453_s1 + $0x60] sm:$0xff]  ;;  %v29_v22 = vld [vmem:[%s453_s1 + $0x68] sm:$0xff]  ;;  %v30_v24 = vld [vmem:[%s453_s1 + $0x70] sm:$0xff]  ;;  %p313_p0 = scmp.ne.s32.totalorder %s198_s22, %s312_s23  ;;  %p318_p2 = scmp.lt.s32.totalorder %s312_s23, %s312_s23 }
   0xa   :  { %v299_v23 = vpack.c.bf16 %v29_v22, %v28_v21  ;;  %v31_v25 = vld [vmem:[%s453_s1 + $0x78] sm:$0xff]  ;;  %v15_v27 = vld [vmem:[%s452_s0] sm:$0xff]  ;;  %v181_v52 = vsub.s32 0, %v180_v50 }
   0xb   :  { %v303_v26 = vpack.c.bf16 %v31_v25, %v30_v24  ;;  %v32_v51 = vld [vmem:[%s454_s2] sm:$0x1]  ;;  %v33_v55 = vld [vmem:[%s454_s2 + $0x1] sm:$0x1]  ;;  %p319_p3 = por %p318_p2, %p317_p1 }
   0xc   :  { %281 = vmatpush3.bf16.xpose.msk.msra.mxu0 %vm368_vm1, %v279_v8 }
   0xd   :  { %282 = vmatprep.subr.bf16.mxu0 %v336_v2  ;;  %p320_p4 = pnand %p319_p3, %p313_p0 }
  0x14   :  { %285 = vmatpush3.bf16.xpose.msk.msra.mxu0 %vm368_vm1, %v283_v11 }
  0x15   :  { %286 = vmatprep.subr.bf16.mxu0 %v336_v2 }
  0x1c   :  { %289 = vmatpush3.bf16.xpose.msk.msra.mxu0 %vm368_vm1, %v287_v14 }
  0x1d   :  { %290 = vmatprep.subr.bf16.mxu0 %v336_v2 }
  0x24   :  { %293 = vmatpush3.bf16.xpose.msk.msra.mxu0 %vm368_vm1, %v291_v17 }
  0x25   :  { %294 = vmatprep.subr.bf16.mxu0 %v336_v2 }
  0x2c   :  { %297 = vmatpush3.bf16.xpose.msk.msra.mxu0 %vm368_vm1, %v295_v20 }
  0x2d   :  { %298 = vmatprep.subr.bf16.mxu0 %v336_v2 }
  0x34   :  { %301 = vmatpush3.bf16.xpose.msk.msra.mxu0 %vm368_vm1, %v299_v23 }
  0x35   :  { %302 = vmatprep.subr.bf16.mxu0 %v336_v2 }
  0x3c   :  { %305 = vmatpush3.bf16.xpose.msk.msra.mxu0 %vm368_vm1, %v303_v26 }
  0x43   :  { %272 = vmatmul.mubr.msk.f32.vlgmr.msra.gmra.mrb[0].mxu0 %vm34_vm0, %v15_v27 }
 0x116   :  { %v152_v28 = vpop.f32.mrb[0].mxu0 }
 0x117   :  { %v156_v29 = vrot.slane %v152_v28, 4  ;;  %v163_v30 = vmul.f32 %v152_v28, %v152_v28  ;;  %v273_v31 = vpop.f32.mrb[1].mxu0 }
 0x119   :  { %v157_v32 = vadd.f32 %v156_v29, %v152_v28  ;;  %v164_v33 = vrot.slane %v163_v30, 4 }
 0x11b   :  { %v158_v34 = vrot.slane %v157_v32, 2  ;;  %v165_v35 = vadd.f32 %v164_v33, %v163_v30 }
 0x11d   :  { %v159_v36 = vadd.f32 %v158_v34, %v157_v32  ;;  %v166_v37 = vrot.slane %v165_v35, 2 }
 0x11f   :  { %v160_v38 = vrot.slane %v159_v36, 1  ;;  %v167_v39 = vadd.f32 %v166_v37, %v165_v35 }
 0x121   :  { %v161_v40 = vadd.f32 %v160_v38, %v159_v36  ;;  %v168_v41 = vrot.slane %v167_v39, 1 }
 0x123   :  { %v162_v42 = vmul.f32 0.125, %v161_v40  ;;  %v169_v43 = vadd.f32 %v168_v41, %v167_v39 }
 0x125   :  { %v170_v44 = vmul.f32 0.125, %v169_v43  ;;  %v171_v45 = vmul.f32 %v162_v42, %v162_v42 }
 0x127   :  { %v172_v46 = vsub.f32 %v170_v44, %v171_v45 }
 0x129   :  { %v173_v47 = vmax.f32 %v172_v46, 0.0 }
 0x12b   :  { %v174_v48 = vadd.f32 1e-05, %v173_v47 }
 0x12d   :  { %310 = vrsqrt.f32 %v174_v48 }
 0x137   :  { %v311_v53 = vpop.eup %310 }
 0x138   :  { %v176_v54 = vmul.f32 %v311_v53, %v32_v51 }
 0x13a   :  { %v177_v56 = vmul.f32 %v176_v54, %v162_v42  ;;  %v182_v57 = vrot.slane %v176_v54, %v181_v52 }
 0x13c   :  { %v178_v58 = vsub.f32 %v33_v55, %v177_v56  ;;  %v183_v59 = vmul.f32 %v182_v57, %v152_v28 }
 0x13e   :  { %v187_v60 = vrot.slane %v178_v58, %v181_v52 }
 0x140   :  { %v188_v61 = vadd.f32 %v187_v60, %v183_v59 }
 0x142   :  { %v189_v62 = vmax.f32 %v188_v61, 0.0 }
 0x144   :  { %190 = vst [vmem:[#allocation2] sm:$0xff] %v189_v62 }
 0x145   :  { %323 = shalt.err (!%p320_p4)
}
 0x146   :  { %s324_s25 = scalar_lea.hbm %s455_s3, 128 }
 0x147   :  { %p325_p5 = scmp.ne.s32.totalorder %s455_s3, %s324_s25  ;;  %p328_p6 = scmp.lt.u32.totalorder %s324_s25, %s455_s3 }
 0x149   :  { %p330_p7 = pnand %p328_p6, %p325_p5 }
 0x14b   :  { %333 = shalt.err (!%p330_p7)
}
 0x14c   :  { %200 = dma.vmem_to_hbm [thread:$0]  %s198_s22, 128, %s455_s3, [#allocation3]  }
 0x14d   :  { %334 = dma.done.wait [#allocation3], 128  }
 0x14e   :  { %335 = vsyncadd [#allocation3], 4294967168 }
 0x14f   :  { %204 = vsyncpa [#allocation3], 1 }

</bundles_post_ra>
